<compile_context>
chip_gen: v6e
topology: v6e:2x2x1
jax: 0.10.0
libtpu: 0.0.40
codegen_flags: <defaults>
</compile_context>

<pallas_src>
import jax
import jax.numpy as jnp
from jax.experimental import pallas as pl
from jax.experimental.pallas import tpu as pltpu

_LANES = 128
# sublane packing per itemsize (rows of a vreg): int8/fp8 -> 32, bf16 -> 16, f32 -> 8
_SUBLANE_PACK = {1: 32, 2: 16, 4: 8, 8: 8}


def _make_scale_kernel(scale: float):
    s = float(scale)  # compile-time constant baked into the kernel

    def kernel(x_ref, o_ref):
        # Weak-typed python-float multiply keeps the tile in its native dtype
        # (bf16 stays bf16 on v6e/v7x; f32 stays f32).
        o_ref[...] = x_ref[...] * s

    return kernel


def _pick_row_tile(rows: int, lane_width: int, itemsize: int) -> int:
    """~1 MiB per tile, rounded to the dtype's sublane packing."""
    pack = _SUBLANE_PACK.get(itemsize, 8)
    target = max(pack, (1 << 20) // max(1, lane_width * itemsize))
    tm = min(rows, target)
    if tm < rows:
        tm = max(pack, (tm // pack) * pack)
    return tm


def _scale_2d(x2d: jax.Array, scale: float) -> jax.Array:
    rows, lanes = x2d.shape
    itemsize = jnp.dtype(x2d.dtype).itemsize
    tm = _pick_row_tile(rows, lanes, itemsize)
    grid = (pl.cdiv(rows, tm),)
    return pl.pallas_call(
        _make_scale_kernel(scale),
        out_shape=jax.ShapeDtypeStruct((rows, lanes), x2d.dtype),
        grid=grid,
        in_specs=[pl.BlockSpec((tm, lanes), lambda i: (i, 0))],
        out_specs=pl.BlockSpec((tm, lanes), lambda i: (i, 0)),
        compiler_params=pltpu.CompilerParams(
            dimension_semantics=("parallel",)),  # lets v7x shard tiles across its 2 TCs
    )(x2d)


def scale_forward(x: jax.Array, scale: float, *, min_bytes_for_kernel: int = 0) -> jax.Array:
    """Elementwise x * scale via a Pallas TPU kernel.

    Same shape/dtype as input. For tensors smaller than `min_bytes_for_kernel`
    (e.g. set it to a few MiB at real call sites) we skip the kernel and let
    XLA fuse the multiply, since launch/step overhead dominates for tiny data.
    """
    n = x.size
    itemsize = jnp.dtype(x.dtype).itemsize
    if x.ndim == 0 or n == 0 or n * itemsize < min_bytes_for_kernel:
        return x * scale

    orig_shape = x.shape
    if n % _LANES == 0:
        # Lane-dense (rows, 128) slab: plain reshape of row-major data, no pad/slice.
        x2d = x.reshape(n // _LANES, _LANES)
    else:
        # Collapse leading dims; keep the full last dim (block last dim == full
        # array dim is always legal, no padding copies needed).
        last = orig_shape[-1]
        x2d = x.reshape(n // last, last)

    out2d = _scale_2d(x2d, scale)
    return out2d.reshape(orig_shape)


if __name__ == "__main__":
    key = jax.random.PRNGKey(0)
    # Small NCHW input consistent with the conv-net preprocessing stage.
    x = jax.random.normal(key, (2, 4, 16, 16), dtype=jnp.float32)
    scale = 1.0 / 255.0  # typical pixel-normalization scale used with Scale()

    y = scale_forward(x, scale)
    jax.block_until_ready(y)

    # Correctness check against the trivial reference.
    ref = x * scale
    assert y.shape == x.shape and y.dtype == x.dtype
    assert jnp.allclose(y, ref, atol=1e-6, rtol=1e-6)

    print("KERNEL_OK")
</pallas_src>

<mosaic_0001>
module attributes {stable_mosaic.version = 11 : i64} {
  func.func @kernel(%arg0: i32, %arg1: memref<16x128xf32, #tpu.memory_space<vmem>>, %arg2: memref<16x128xf32, #tpu.memory_space<vmem>>) attributes {dimension_semantics = [#tpu.dimension_semantics<parallel>], iteration_bounds = array<i64: 1>, scalar_prefetch = 0 : i64, scratch_operands = 0 : i64, tpu.core_type = #tpu.core_type<tc>, window_params = [{transform_indices = @transform_0, window_bounds = array<i64: 16, 128>}, {transform_indices = @transform_1, window_bounds = array<i64: 16, 128>}]} {
    %c0 = arith.constant 0 : index
    %c0_0 = arith.constant 0 : index
    %0 = vector.load %arg1[%c0, %c0_0] : memref<16x128xf32, #tpu.memory_space<vmem>>, vector<16x128xf32>
    %cst = arith.constant 0.00392156886 : f32
    %1 = vector.broadcast %cst : f32 to vector<16x128xf32>
    %2 = arith.mulf %0, %1 : vector<16x128xf32>
    %c0_1 = arith.constant 0 : index
    %c0_2 = arith.constant 0 : index
    %3 = vector.load %arg2[%c0_1, %c0_2] : memref<16x128xf32, #tpu.memory_space<vmem>>, vector<16x128xf32>
    tpu.vector_store %arg2[%c0_1, %c0_2], %2 {strides = array<i32>} : memref<16x128xf32, #tpu.memory_space<vmem>>, vector<16x128xf32>,
    return
  }
  func.func @transform_0(%arg0: i32) -> (i32, i32) {
    %c0_i32 = arith.constant 0 : i32
    %c0_i32_0 = arith.constant 0 : i32
    return %arg0, %c0_i32 : i32, i32
  }
  func.func @transform_1(%arg0: i32) -> (i32, i32) {
    %c0_i32 = arith.constant 0 : i32
    %c0_i32_0 = arith.constant 0 : i32
    return %arg0, %c0_i32 : i32, i32
  }
}

</mosaic_0001>

<bundles_post_ra>
// kernel: tpu_custom_call.1
= control target key start
LH: loop header
LB: loop body
LE: loop exit
PB: predicated region body
PF: predicated region fallthrough
CT: control target
= control target key end

     0   :  { %6 = vsyncpa [#allocation3], 0  ;;  %s114_s0 = inlined_call_operand.hbm [shape: f32[16,128], index: 0, kind: input, shape index: {}]   ;;  %s115_s1 = inlined_call_operand.hbm [shape: f32[16,128], index: 1, kind: output, shape index: {}]  }
   0x1   :  { %7 = vsyncpa [#allocation4], 0  ;;  %s94_s6 = smov [#allocation2]  }
   0x2   :  { %s13_s7 = sshll.u32 %s94_s6, 4  ;;  %s14_s7 = int_to_ptr.vmem [resolvable:$true] %s13_s7 }
   0x3   :  { %s58_s8 = scalar_lea.vmem %s14_s7, 256  ;;  %p63_p1 = scmp.lt.s32.totalorder %s14_s7, %s14_s7 }
   0x4   :  { %p59_p0 = scmp.ne.s32.totalorder %s14_s7, %s58_s8  ;;  %p64_p2 = scmp.lt.s32.totalorder %s58_s8, %s58_s8 }
   0x6   :  { %p65_p3 = por %p64_p2, %p63_p1 }
   0x8   :  { %p66_p4 = pnand %p65_p3, %p59_p0 }
   0xa   :  { %69 = shalt.err (!%p66_p4)
}
   0xb   :  { %s95_s9 = smov 128   ;;  %s96_s10 = smov 8  }
   0xc   :  { %19 = dma.hbm_to_vmem [thread:$0]  %s114_s0, 256, %s14_s7, [#allocation3], %s95_s9, %s95_s9, %s96_s10  }
   0xd   :  { %90 = dma.done.wait [#allocation3], 256  }
   0xe   :  { %91 = vsyncadd [#allocation3], 4294967040  ;;  %s97_s13 = smov [#allocation5]   ;;  %v23_v0 = vld [vmem:[#allocation2] sm:$0xff]  ;;  %v24_v1 = vld [vmem:[#allocation2 + $0x8] sm:$0xff] }
   0xf   :  { %s34_s14 = sshll.u32 %s97_s13, 4  ;;  %v25_v2 = vmul.f32 0.003921569, %v23_v0  ;;  %v26_v3 = vmul.f32 0.003921569, %v24_v1  ;;  %s35_s14 = int_to_ptr.vmem [resolvable:$true] %s34_s14 }
  0x10   :  { %s70_s15 = scalar_lea.vmem %s35_s14, 256  ;;  %p75_p6 = scmp.lt.s32.totalorder %s35_s14, %s35_s14 }
  0x11   :  { %27 = vst [vmem:[#allocation5] sm:$0xff] %v25_v2  ;;  %28 = vst [vmem:[#allocation5 + $0x8] sm:$0xff] %v26_v3  ;;  %p71_p5 = scmp.ne.s32.totalorder %s35_s14, %s70_s15  ;;  %p76_p7 = scmp.lt.s32.totalorder %s70_s15, %s70_s15 }
  0x13   :  { %p77_p8 = por %p76_p7, %p75_p6 }
  0x15   :  { %p78_p9 = pnand %p77_p8, %p71_p5 }
  0x17   :  { %81 = shalt.err (!%p78_p9)
}
  0x18   :  { %40 = dma.vmem_to_hbm [thread:$0]  %s35_s14, 256, %s115_s1, [#allocation4], %s95_s9, %s95_s9, %s96_s10  }
  0x19   :  { %92 = dma.done.wait [#allocation4], 256  }
  0x1a   :  { %93 = vsyncadd [#allocation4], 4294967040 }
  0x1b   :  { %44 = vsyncpa [#allocation3], 1 }
  0x1c   :  { %45 = vsyncpa [#allocation4], 1 }

</bundles_post_ra>
